<compile_context>
chip_gen: v7x
topology: tpu7x:2x2x1
jax: 0.10.0
libtpu: 0.0.40
codegen_flags: <defaults>
</compile_context>

<pallas_src>
import jax
import jax.numpy as jnp
from jax.experimental import pallas as pl
from jax.experimental.pallas import tpu as pltpu

SIZE_LIST = [256, 128, 64, 10]   # size_list passed to Simple_MLP
OUT_PAD = 128                    # lane-dense logits width; real logits = [:, :10]
TB_MAX = 512                     # batch-tile rows for large B (per-step overhead ~0.35 us)


def _round_up(n, m):
    return ((n + m - 1) // m) * m


def _mlp_kernel(x_ref, w1_ref, b1_ref, w2_ref, b2_ref, w3_ref, b3_ref, o_ref):
    # Layer 1: (TB,256)bf16 @ (256,128)bf16 -> f32 acc (MXU); bias/ReLU in f32 (VPU).
    h1 = jnp.dot(x_ref[...], w1_ref[...], preferred_element_type=jnp.float32) + b1_ref[...]
    h1 = jnp.maximum(h1, 0.0).astype(jnp.bfloat16)
    # Layer 2: (TB,128) @ (128,64); h2 lives in a 64-lane half-vreg (no padding needed).
    h2 = jnp.dot(h1, w2_ref[...], preferred_element_type=jnp.float32) + b2_ref[...]
    h2 = jnp.maximum(h2, 0.0).astype(jnp.bfloat16)
    # Layer 3: (TB,64) @ (64,128) -> lane-dense (TB,128) store; logits in [:, :10].
    o_ref[...] = (jnp.dot(h2, w3_ref[...], preferred_element_type=jnp.float32)
                  + b3_ref[...]).astype(o_ref.dtype)


def prepare_params(params):
    """One-time prep (hoisted off the hot path):
       - transpose torch-style (out, in) weights to (in, out),
       - cast weights to bf16 (MXU-native), keep biases f32 (bias-add stays f32),
       - pad ONLY the final layer's output dim 10 -> 128 for a lane-dense store."""
    (w1, b1), (w2, b2), (w3, b3) = params
    w1t = jnp.asarray(w1, jnp.float32).T.astype(jnp.bfloat16)                    # (256,128)
    w2t = jnp.asarray(w2, jnp.float32).T.astype(jnp.bfloat16)                    # (128, 64)
    w3t = jnp.asarray(w3, jnp.float32).T                                          # ( 64, 10)
    w3t = jnp.pad(w3t, ((0, 0), (0, OUT_PAD - w3t.shape[1]))).astype(jnp.bfloat16)  # (64,128)
    b1r = jnp.asarray(b1, jnp.float32).reshape(1, -1)                             # (1, 128)
    b2r = jnp.asarray(b2, jnp.float32).reshape(1, -1)                             # (1,  64)
    b3r = jnp.pad(jnp.asarray(b3, jnp.float32).reshape(1, -1),
                  ((0, 0), (0, OUT_PAD - SIZE_LIST[-1])))                         # (1, 128)
    return (w1t, b1r, w2t, b2r, w3t, b3r)


@jax.jit
def simple_mlp_forward(x, prepped):
    """x: any shape whose trailing elements flatten to (B, SIZE_LIST[0]).
    prepped: output of prepare_params(params) — already transposed/padded/bf16."""
    d_in = SIZE_LIST[0]
    x2d = x.reshape(-1, d_in)                      # torch's x.view(-1, size_list[0])
    B = x2d.shape[0]

    # Batch tiling: one grid step for small B; TB_MAX-row tiles when B is large.
    TB = _round_up(B, 8) if B <= TB_MAX else TB_MAX
    B_pad = _round_up(B, TB)
    num_blocks = B_pad // TB

    x_p = jnp.pad(x2d.astype(jnp.float32), ((0, B_pad - B), (0, 0))).astype(jnp.bfloat16)

    w1t, b1r, w2t, b2r, w3t, b3r = prepped
    # Constant index_map -> block DMA'd once, stays VMEM-resident across grid steps.
    const2d = lambda shape: pl.BlockSpec(shape, lambda i: (0, 0))

    # Advisory hint for XLA scheduling (bf16 operands = 2 B, f32 biases/out = 4 B).
    flops = 2 * B_pad * (256 * 128 + 128 * 64 + 64 * OUT_PAD)
    bytes_accessed = (2 * (x_p.size + w1t.size + w2t.size + w3t.size)
                      + 4 * (b1r.size + b2r.size + b3r.size + B_pad * OUT_PAD))

    out_padded = pl.pallas_call(
        _mlp_kernel,
        out_shape=jax.ShapeDtypeStruct((B_pad, OUT_PAD), jnp.float32),
        grid=(num_blocks,),
        in_specs=[
            pl.BlockSpec((TB, d_in), lambda i: (i, 0)),
            const2d(w1t.shape), const2d(b1r.shape),
            const2d(w2t.shape), const2d(b2r.shape),
            const2d(w3t.shape), const2d(b3r.shape),
        ],
        out_specs=pl.BlockSpec((TB, OUT_PAD), lambda i: (i, 0)),
        compiler_params=pltpu.CompilerParams(dimension_semantics=("parallel",)),
        cost_estimate=pl.CostEstimate(flops=flops, transcendentals=0,
                                      bytes_accessed=bytes_accessed),
    )(x_p, w1t, b1r, w2t, b2r, w3t, b3r)

    # Slice padded rows / lane-padded logits back to true shape outside the kernel.
    return out_padded[:B, :SIZE_LIST[-1]]


def init_params(key):
    """Deterministic synthetic init; shapes match nn.Linear(in, out): W (out, in), b (out,)."""
    params = []
    for i in range(len(SIZE_LIST) - 1):
        key, kw, kb = jax.random.split(key, 3)
        fan_in, fan_out = SIZE_LIST[i], SIZE_LIST[i + 1]
        bound = 1.0 / (fan_in ** 0.5)   # same scale as torch default Linear init
        w = jax.random.uniform(kw, (fan_out, fan_in), jnp.float32, -bound, bound)
        b = jax.random.uniform(kb, (fan_out,), jnp.float32, -bound, bound)
        params.append((w, b))
    return params


def reference_forward(x, params):
    h = x.reshape(-1, SIZE_LIST[0]).astype(jnp.float32)
    for i, (w, b) in enumerate(params):
        h = h @ w.T + b
        if i < len(params) - 1:
            h = jnp.maximum(h, 0.0)
    return h


if __name__ == "__main__":
    key = jax.random.PRNGKey(0)
    kx, kp, kx2 = jax.random.split(key, 3)

    params = init_params(kp)
    # One-time param prep (transpose + bf16 cast + lane padding) — off the hot path.
    prepped = jax.block_until_ready(prepare_params(params))

    # Small case: NCHW (2, 4, 16, 16) flattens to (8, 256) — single grid step.
    x = jax.random.normal(kx, (2, 4, 16, 16), jnp.float32)
    out = jax.block_until_ready(simple_mlp_forward(x, prepped))
    ref = reference_forward(x, params)
    assert out.shape == (8, SIZE_LIST[-1])
    # bf16 weight/activation quantization vs f32 reference -> loosened tolerance.
    assert jnp.allclose(out, ref, atol=2e-2, rtol=2e-2), "mismatch vs. reference (B=8)"

    # Larger batch exercises the batch grid (TB=512 tiles, resident weights, row padding).
    x_big = jax.random.normal(kx2, (1000, SIZE_LIST[0]), jnp.float32)
    out_big = jax.block_until_ready(simple_mlp_forward(x_big, prepped))
    ref_big = reference_forward(x_big, params)
    assert out_big.shape == (1000, SIZE_LIST[-1])
    assert jnp.allclose(out_big, ref_big, atol=2e-2, rtol=2e-2), "mismatch vs. reference (B=1000)"

    print("KERNEL_OK")
</pallas_src>

<mosaic_0001>
module attributes {stable_mosaic.version = 11 : i64} {
  func.func @_mlp_kernel(%arg0: i32, %arg1: memref<8x256xbf16, #tpu.memory_space<vmem>>, %arg2: memref<256x128xbf16, #tpu.memory_space<vmem>>, %arg3: memref<1x128xf32, #tpu.memory_space<vmem>>, %arg4: memref<128x64xbf16, #tpu.memory_space<vmem>>, %arg5: memref<1x64xf32, #tpu.memory_space<vmem>>, %arg6: memref<64x128xbf16, #tpu.memory_space<vmem>>, %arg7: memref<1x128xf32, #tpu.memory_space<vmem>>, %arg8: memref<8x128xf32, #tpu.memory_space<vmem>>) attributes {dimension_semantics = [#tpu.dimension_semantics<parallel>], iteration_bounds = array<i64: 1>, scalar_prefetch = 0 : i64, scratch_operands = 0 : i64, tpu.core_type = #tpu.core_type<tc>, window_params = [{transform_indices = @transform_0, window_bounds = array<i64: 8, 256>}, {pipeline_mode = #tpu.pipeline_mode<synchronous>, transform_indices = @transform_1, window_bounds = array<i64: 256, 128>}, {pipeline_mode = #tpu.pipeline_mode<synchronous>, transform_indices = @transform_2, window_bounds = array<i64: 1, 128>}, {pipeline_mode = #tpu.pipeline_mode<synchronous>, transform_indices = @transform_3, window_bounds = array<i64: 128, 64>}, {pipeline_mode = #tpu.pipeline_mode<synchronous>, transform_indices = @transform_4, window_bounds = array<i64: 1, 64>}, {pipeline_mode = #tpu.pipeline_mode<synchronous>, transform_indices = @transform_5, window_bounds = array<i64: 64, 128>}, {pipeline_mode = #tpu.pipeline_mode<synchronous>, transform_indices = @transform_6, window_bounds = array<i64: 1, 128>}, {transform_indices = @transform_7, window_bounds = array<i64: 8, 128>}]} {
    %c0 = arith.constant 0 : index
    %c0_0 = arith.constant 0 : index
    %0 = vector.load %arg1[%c0, %c0_0] : memref<8x256xbf16, #tpu.memory_space<vmem>>, vector<8x256xbf16>
    %c0_1 = arith.constant 0 : index
    %c0_2 = arith.constant 0 : index
    %1 = vector.load %arg2[%c0_1, %c0_2] : memref<256x128xbf16, #tpu.memory_space<vmem>>, vector<256x128xbf16>
    %cst = arith.constant dense<0.000000e+00> : vector<8x128xf32>
    %2 = tpu.matmul %0, %1, %cst {dimension_numbers = #tpu.dot_dimension_numbers<[1], [0], [0], [1], [0, 0, 1, 1], [], []>} : vector<8x256xbf16>, vector<256x128xbf16>, vector<8x128xf32> -> vector<8x128xf32>
    %c0_3 = arith.constant 0 : index
    %c0_4 = arith.constant 0 : index
    %3 = vector.load %arg3[%c0_3, %c0_4] : memref<1x128xf32, #tpu.memory_space<vmem>>, vector<1x128xf32>
    %4 = vector.broadcast %3 : vector<1x128xf32> to vector<8x128xf32>
    %5 = arith.addf %2, %4 : vector<8x128xf32>
    %cst_5 = arith.constant 0.000000e+00 : f32
    %6 = vector.broadcast %cst_5 : f32 to vector<8x128xf32>
    %7 = arith.maximumf %5, %6 : vector<8x128xf32>
    %8 = arith.truncf %7 : vector<8x128xf32> to vector<8x128xbf16>
    %c0_6 = arith.constant 0 : index
    %c0_7 = arith.constant 0 : index
    %9 = vector.load %arg4[%c0_6, %c0_7] : memref<128x64xbf16, #tpu.memory_space<vmem>>, vector<128x64xbf16>
    %cst_8 = arith.constant dense<0.000000e+00> : vector<8x64xf32>
    %10 = tpu.matmul %8, %9, %cst_8 {dimension_numbers = #tpu.dot_dimension_numbers<[1], [0], [0], [1], [0, 0, 1, 1], [], []>} : vector<8x128xbf16>, vector<128x64xbf16>, vector<8x64xf32> -> vector<8x64xf32>
    %c0_9 = arith.constant 0 : index
    %c0_10 = arith.constant 0 : index
    %11 = vector.load %arg5[%c0_9, %c0_10] : memref<1x64xf32, #tpu.memory_space<vmem>>, vector<1x64xf32>
    %12 = vector.broadcast %11 : vector<1x64xf32> to vector<8x64xf32>
    %13 = arith.addf %10, %12 : vector<8x64xf32>
    %cst_11 = arith.constant 0.000000e+00 : f32
    %14 = vector.broadcast %cst_11 : f32 to vector<8x64xf32>
    %15 = arith.maximumf %13, %14 : vector<8x64xf32>
    %16 = arith.truncf %15 : vector<8x64xf32> to vector<8x64xbf16>
    %c0_12 = arith.constant 0 : index
    %c0_13 = arith.constant 0 : index
    %17 = vector.load %arg6[%c0_12, %c0_13] : memref<64x128xbf16, #tpu.memory_space<vmem>>, vector<64x128xbf16>
    %cst_14 = arith.constant dense<0.000000e+00> : vector<8x128xf32>
    %18 = tpu.matmul %16, %17, %cst_14 {dimension_numbers = #tpu.dot_dimension_numbers<[1], [0], [0], [1], [0, 0, 1, 1], [], []>} : vector<8x64xbf16>, vector<64x128xbf16>, vector<8x128xf32> -> vector<8x128xf32>
    %c0_15 = arith.constant 0 : index
    %c0_16 = arith.constant 0 : index
    %19 = vector.load %arg7[%c0_15, %c0_16] : memref<1x128xf32, #tpu.memory_space<vmem>>, vector<1x128xf32>
    %20 = vector.broadcast %19 : vector<1x128xf32> to vector<8x128xf32>
    %21 = arith.addf %18, %20 : vector<8x128xf32>
    %c0_17 = arith.constant 0 : index
    %c0_18 = arith.constant 0 : index
    %22 = vector.load %arg8[%c0_17, %c0_18] : memref<8x128xf32, #tpu.memory_space<vmem>>, vector<8x128xf32>
    tpu.vector_store %arg8[%c0_17, %c0_18], %21 {strides = array<i32>} : memref<8x128xf32, #tpu.memory_space<vmem>>, vector<8x128xf32>,
    return
  }
  func.func @transform_0(%arg0: i32) -> (i32, i32) {
    %c0_i32 = arith.constant 0 : i32
    %c0_i32_0 = arith.constant 0 : i32
    return %arg0, %c0_i32 : i32, i32
  }
  func.func @transform_1(%arg0: i32) -> (i32, i32) {
    %c0_i32 = arith.constant 0 : i32
    %c0_i32_0 = arith.constant 0 : i32
    %c0_i32_1 = arith.constant 0 : i32
    return %c0_i32, %c0_i32_0 : i32, i32
  }
  func.func @transform_2(%arg0: i32) -> (i32, i32) {
    %c0_i32 = arith.constant 0 : i32
    %c0_i32_0 = arith.constant 0 : i32
    %c0_i32_1 = arith.constant 0 : i32
    return %c0_i32, %c0_i32_0 : i32, i32
  }
  func.func @transform_3(%arg0: i32) -> (i32, i32) {
    %c0_i32 = arith.constant 0 : i32
    %c0_i32_0 = arith.constant 0 : i32
    %c0_i32_1 = arith.constant 0 : i32
    return %c0_i32, %c0_i32_0 : i32, i32
  }
  func.func @transform_4(%arg0: i32) -> (i32, i32) {
    %c0_i32 = arith.constant 0 : i32
    %c0_i32_0 = arith.constant 0 : i32
    %c0_i32_1 = arith.constant 0 : i32
    return %c0_i32, %c0_i32_0 : i32, i32
  }
  func.func @transform_5(%arg0: i32) -> (i32, i32) {
    %c0_i32 = arith.constant 0 : i32
    %c0_i32_0 = arith.constant 0 : i32
    %c0_i32_1 = arith.constant 0 : i32
    return %c0_i32, %c0_i32_0 : i32, i32
  }
  func.func @transform_6(%arg0: i32) -> (i32, i32) {
    %c0_i32 = arith.constant 0 : i32
    %c0_i32_0 = arith.constant 0 : i32
    %c0_i32_1 = arith.constant 0 : i32
    return %c0_i32, %c0_i32_0 : i32, i32
  }
  func.func @transform_7(%arg0: i32) -> (i32, i32) {
    %c0_i32 = arith.constant 0 : i32
    %c0_i32_0 = arith.constant 0 : i32
    return %arg0, %c0_i32 : i32, i32
  }
}

</mosaic_0001>

<bundles_post_ra>
// kernel: simple_mlp_forward.1
= control target key start
LH: loop header
LB: loop body
LE: loop exit
PB: predicated region body
PF: predicated region fallthrough
CT: control target
= control target key end

     0   :  { %v583_v2 = vmov 0.0   ;;  %s748_s0 = inlined_call_operand.vmem [shape: bf16[8,256], index: 0, kind: input, shape index: {}]   ;;  %s749_s1 = inlined_call_operand.vmem [shape: bf16[256,128], index: 1, kind: input, shape index: {}]   ;;  %s750_s2 = inlined_call_operand.vmem [shape: f32[1,128], index: 2, kind: input, shape index: {}]   ;;  %s751_s3 = inlined_call_operand.vmem [shape: bf16[128,64], index: 3, kind: input, shape index: {}]   ;;  %s752_s4 = inlined_call_operand.vmem [shape: f32[1,64], index: 4, kind: input, shape index: {}]   ;;  %s753_s5 = inlined_call_operand.vmem [shape: bf16[64,128], index: 5, kind: input, shape index: {}]   ;;  %s754_s6 = inlined_call_operand.vmem [shape: f32[1,128], index: 6, kind: input, shape index: {}]   ;;  %s755_s7 = inlined_call_operand.hbm [shape: f32[8,128], index: 7, kind: output, shape index: {}]  }
   0x1   :  { %v529_v0 = vld [vmem:[%s749_s1 + $0x40] sm:$0xff]   ;;  %494 = vmatprep.subr.bf16.mxu1 %v583_v2  ;;  %v531_v3 = vld [vmem:[%s749_s1 + $0x48] sm:$0xff]   ;;  %v533_v5 = vld [vmem:[%s749_s1 + $0x50] sm:$0xff]  }
   0x2   :  { %v530_v1 = vld [vmem:[%s749_s1] sm:$0xff]   ;;  %458 = vmatprep.subr.bf16.mxu0 %v529_v0  ;;  %v532_v4 = vld [vmem:[%s749_s1 + $0x8] sm:$0xff]   ;;  %v534_v6 = vld [vmem:[%s749_s1 + $0x10] sm:$0xff]  }
   0x3   :  { %459 = vmatpush3.bf16.msra.mxu0 %v530_v1  ;;  %v535_v7 = vld [vmem:[%s749_s1 + $0x58] sm:$0xff]   ;;  %v537_v9 = vld [vmem:[%s749_s1 + $0x60] sm:$0xff]   ;;  %v539_v11 = vld [vmem:[%s749_s1 + $0x68] sm:$0xff]  }
   0x4   :  { %460 = vmatprep.subr.bf16.mxu0 %v531_v3  ;;  %v536_v8 = vld [vmem:[%s749_s1 + $0x18] sm:$0xff]   ;;  %v538_v10 = vld [vmem:[%s749_s1 + $0x20] sm:$0xff]   ;;  %v540_v15 = vld [vmem:[%s749_s1 + $0x28] sm:$0xff]  }
   0x5   :  { %v28_v12 = vld [vmem:[%s748_s0] sm:$0xff]  ;;  %v541_v16 = vld [vmem:[%s749_s1 + $0x70] sm:$0xff]   ;;  %v548_v17 = vld [vmem:[%s751_s3 + $0x8] sm:$0xff]  }
   0x6   :  { %v426_v13 = vcombine.high %v28_v12, %v28_v12  ;;  %v547_v14 = vld [vmem:[%s751_s3] sm:$0xff]   ;;  %v542_v18 = vld [vmem:[%s749_s1 + $0x30] sm:$0xff]   ;;  %v543_v19 = vld [vmem:[%s749_s1 + $0x78] sm:$0xff]  }
   0x7   :  { %461 = vmatpush3.bf16.msra.mxu0 %v532_v4  ;;  %495 = vmatpush3.bf16.msra.mxu1 %v547_v14  ;;  %v549_v20 = vld [vmem:[%s751_s3 + $0x10] sm:$0xff]  }
   0x8   :  { %462 = vmatprep.subr.bf16.mxu0 %v533_v5  ;;  %203 = vmatprep.mubr.bf16.mxu0 %v426_v13 }
   0x9   :  { %496 = vmatprep.subr.bf16.mxu1 %v583_v2 }
   0xb   :  { %463 = vmatpush3.bf16.msra.mxu0 %v534_v6  ;;  %497 = vmatpush3.bf16.msra.mxu1 %v548_v17 }
   0xc   :  { %464 = vmatprep.subr.bf16.mxu0 %v535_v7  ;;  %498 = vmatprep.subr.bf16.mxu1 %v583_v2 }
   0xf   :  { %465 = vmatpush3.bf16.msra.mxu0 %v536_v8 }
  0x10   :  { %466 = vmatprep.subr.bf16.mxu0 %v537_v9 }
  0x13   :  { %467 = vmatpush3.bf16.msra.mxu0 %v538_v10 }
  0x14   :  { %468 = vmatprep.subr.bf16.mxu0 %v539_v11 }
  0x17   :  { %469 = vmatpush3.bf16.msra.mxu0 %v540_v15 }
  0x18   :  { %470 = vmatprep.subr.bf16.mxu0 %v541_v16 }
  0x19   :  { %12 = vsyncpa [#allocation3], 0  ;;  %v544_v21 = vld [vmem:[%s749_s1 + $0x38] sm:$0xff]   ;;  %499 = vmatpush3.bf16.msra.mxu1 %v549_v20  ;;  %v425_v23 = vcombine.low %v28_v12, %v28_v12  ;;  %v551_v24 = vld [vmem:[%s751_s3 + $0x20] sm:$0xff]   ;;  %vm584_vm0 = vmmov 0   ;;  %vm365_vm1 = vcmask 523264  }
  0x1a   :  { %v550_v22 = vld [vmem:[%s751_s3 + $0x18] sm:$0xff]   ;;  %500 = vmatprep.subr.bf16.mxu1 %v583_v2  ;;  %v552_v25 = vld [vmem:[%s751_s3 + $0x28] sm:$0xff]   ;;  %v553_v26 = vld [vmem:[%s751_s3 + $0x30] sm:$0xff]   ;;  %510 = vmatprep.mubr.msk.bf16.mxu1 %vm584_vm0, %v583_v2  ;;  %s585_s14 = smov [#allocation2]  }
  0x1b   :  { %471 = vmatpush3.bf16.msra.mxu0 %v542_v18  ;;  %v554_v27 = vld [vmem:[%s751_s3 + $0x38] sm:$0xff]   ;;  %v555_v28 = vld [vmem:[%s753_s5] sm:$0xff]   ;;  %v556_v29 = vld [vmem:[%s753_s5 + $0x8] sm:$0xff]  }
  0x1c   :  { %472 = vmatprep.subr.bf16.mxu0 %v543_v19  ;;  %v424_v31 = vld [vmem:[%s750_s2] ss:$0 sm:$0xff]  ;;  %v557_v39 = vld [vmem:[%s753_s5 + $0x10] sm:$0xff]   ;;  %v558_v40 = vld [vmem:[%s753_s5 + $0x18] sm:$0xff]   ;;  %s416_s5 = sshll.u32 %s585_s14, 4  ;;  %s417_s5 = int_to_ptr.vmem [resolvable:$true] %s416_s5 }
  0x1d   :  { %501 = vmatpush3.bf16.msra.mxu1 %v550_v22  ;;  %v443_v41 = vld [vmem:[%s752_s4] ss:$0 sm:$0xff]  ;;  %s559_s4 = scalar_lea.vmem %s417_s5, 128  ;;  %p564_p1 = scmp.lt.s32.totalorder %s417_s5, %s417_s5 }
  0x1e   :  { %502 = vmatprep.subr.bf16.mxu1 %v583_v2  ;;  %v452_v49 = vld [vmem:[%s754_s6] ss:$0 sm:$0xff]  ;;  %p560_p0 = scmp.ne.s32.totalorder %s417_s5, %s559_s4  ;;  %p565_p2 = scmp.lt.s32.totalorder %s559_s4, %s559_s4 }
  0x1f   :  { %473 = vmatpush3.bf16.msra.mxu0 %v544_v21 }
  0x20   :  { %514 = vmatprep.subr.bf16.mxu0 %v583_v2  ;;  %p566_p3 = por %p565_p2, %p564_p1 }
  0x21   :  { %503 = vmatpush3.bf16.msra.mxu1 %v551_v24 }
  0x22   :  { %204 = vmatmul.mubr.bf16.vlgmr.msra.gmra.mrb[0].mxu0 %v425_v23  ;;  %504 = vmatprep.subr.bf16.mxu1 %v583_v2  ;;  %p567_p4 = pnand %p566_p3, %p560_p0 }
  0x23   :  { %522 = vmatprep.mubr.msk.bf16.mxu0 %vm584_vm0, %v583_v2  ;;  %515 = vmatpush3.bf16.msra.mxu0 %v555_v28 }
  0x24   :  { %516 = vmatprep.subr.bf16.mxu0 %v583_v2 }
  0x25   :  { %505 = vmatpush3.bf16.msra.mxu1 %v552_v25 }
  0x26   :  { %506 = vmatprep.subr.bf16.mxu1 %v583_v2 }
  0x27   :  { %517 = vmatpush3.bf16.msra.mxu0 %v556_v29 }
  0x28   :  { %518 = vmatprep.subr.bf16.mxu0 %v583_v2 }
  0x29   :  { %507 = vmatpush3.bf16.msra.mxu1 %v553_v26 }
  0x2a   :  { %508 = vmatprep.subr.bf16.mxu1 %v583_v2 }
  0x2b   :  { %519 = vmatpush3.bf16.msra.mxu0 %v557_v39 }
  0x2c   :  { %520 = vmatprep.subr.bf16.mxu0 %v583_v2 }
  0x2d   :  { %509 = vmatpush3.bf16.msra.mxu1 %v554_v27 }
  0x2f   :  { %521 = vmatpush3.bf16.msra.mxu0 %v558_v40 }
  0xf5   :  { %v474_v30 = vpop.f32.mrb[0].mxu0 }
  0xf6   :  { %v475_v32 = vpop.f32.mrb[1].mxu0 }
  0xf7   :  { %v476_v33 = vadd.f32 %v475_v32, %v474_v30  ;;  %v477_v34 = vpop.f32.mrb[2].mxu0 }
  0xf8   :  { %v478_v35 = vpop.f32.mrb[3].mxu0 }
  0xf9   :  { %v206_v36 = vadd.f32 %v476_v33, %v424_v31 }
  0xfb   :  { %v211_v37 = vmax.f32 %v206_v36, 0.0 }
  0xfd   :  { %v212_v38 = vpack.c.bf16 %v211_v37, %v211_v37 }
  0xff   :  { %511 = vmatmul.mubr.bf16.vlgmr.msra.gmra.mrb[0].mxu1 %v212_v38 }
 0x1d2   :  { %v318_v42 = vpop.f32.mrb[0].mxu1 }
 0x1d3   :  { %v319_v43 = vadd.f32 %v443_v41, %v318_v42  ;;  %v512_v44 = vpop.f32.mrb[1].mxu1 }
 0x1d4   :  { %v321_v45 = vpop.f32.mrb[2].mxu1 }
 0x1d5   :  { %v324_v46 = vmax.f32 %v319_v43, 0.0  ;;  %v513_v47 = vpop.f32.mrb[3].mxu1 }
 0x1d7   :  { %v325_v48 = vpack.c.bf16 %v324_v46, %v324_v46 }
 0x1d9   :  { %523 = vmatmul.mubr.msk.bf16.vlgmr.msra.gmra.mrb[4].mxu0 %vm365_vm1, %v325_v48 }
 0x2ac   :  { %v403_v50 = vpop.f32.mrb[4].mxu0 }
 0x2ad   :  { %v404_v51 = vadd.f32 %v452_v49, %v403_v50  ;;  %v524_v52 = vpop.f32.mrb[5].mxu0 }
 0x2ae   :  { %v406_v53 = vpop.f32.mrb[6].mxu0 }
 0x2af   :  { %409 = vst [vmem:[#allocation2] sm:$0xff] %v404_v51  ;;  %v525_v54 = vpop.f32.mrb[7].mxu0 }
 0x2b0   :  { %570 = shalt.err (!%p567_p4)
}
 0x2b1   :  { %s571_s6 = scalar_lea.hbm %s755_s7, 128 }
 0x2b2   :  { %p572_p5 = scmp.ne.s32.totalorder %s755_s7, %s571_s6  ;;  %p575_p6 = scmp.lt.u32.totalorder %s571_s6, %s755_s7 }
 0x2b4   :  { %p577_p7 = pnand %p575_p6, %p572_p5 }
 0x2b6   :  { %580 = shalt.err (!%p577_p7)
}
 0x2b7   :  { %419 = dma.vmem_to_hbm [thread:$0]  %s417_s5, 128, %s755_s7, [#allocation3]  }
 0x2b8   :  { %581 = dma.done.wait [#allocation3], 128  }
 0x2b9   :  { %582 = vsyncadd [#allocation3], 4294967168 }
 0x2ba   :  { %423 = vsyncpa [#allocation3], 1 }

</bundles_post_ra>
